<compile_context>
chip_gen: v7x
topology: tpu7x:2x2x1
jax: 0.10.0
libtpu: 0.0.40
codegen_flags: <defaults>
</compile_context>

<pallas_src>
import numpy as np
import jax
import jax.numpy as jnp
from jax.experimental import pallas as pl
from jax.experimental.pallas import tpu as pltpu

EPS = 0.003


def _round_up(x, m):
    return ((x + m - 1) // m) * m


def _cdiv(a, b):
    return (a + b - 1) // b


def qnet_kernel(x_ref,
                w_in_ref, b_in_ref,
                w_s2_ref, b_s2_ref,
                w_mid_s_ref, w_mid_a_ref, b_mid_ref,
                w_head_ref, b_head_ref,
                out_ref):
    f32 = jnp.float32
    bf16 = jnp.bfloat16

    def dot(a, w_ref):  # bf16 x bf16 -> f32 accumulation on the MXU
        return jnp.dot(a, w_ref[...], preferred_element_type=f32)

    x = x_ref[...]                                                        # (TB, din_pad) bf16

    # Fused input projections: [state|action|0] @ block_diag(W_fcs1, W_fca1).
    sa = jnp.maximum(dot(x, w_in_ref) + b_in_ref[...], 0.0).astype(bf16)  # (TB, 384)
    s1 = sa[:, :256]                                                      # relu(fcs1(state))
    a1 = sa[:, 256:]                                                      # relu(fca1(action))

    s2 = jnp.maximum(dot(s1, w_s2_ref) + b_s2_ref[...], 0.0).astype(bf16)  # (TB, 128)

    # Fused V1/A1 hidden layer, split by input source (no concat needed):
    #   cols 0..127  = V1(s2)
    #   cols 128..255 = A1(cat(s2, a1))
    mid = dot(s2, w_mid_s_ref) + dot(a1, w_mid_a_ref) + b_mid_ref[...]     # (TB, 256) f32
    h = jnp.maximum(mid, 0.0).astype(bf16)                                 # (v_act | a_act)

    # Fused heads: h @ block_diag-permuted(W_V2, W_A2) -> (TB, 2); col0 = A, col1 = V.
    head = dot(h, w_head_ref) + b_head_ref[...]                            # (TB, 2) f32

    # Module returns (A, V*V): square only the V column.
    col = jax.lax.broadcasted_iota(jnp.int32, head.shape, 1)
    out_ref[...] = jnp.where(col == 1, head * head, head)


def prepare_params(params, state_dim, action_dim):
    """Fuse / transpose / cast torch-semantic params into kernel params (weights bf16)."""
    (w_fcs1, b_fcs1, w_fcs2, b_fcs2, w_fca1, b_fca1,
     w_v1, b_v1, w_v2, b_v2, w_a1, b_a1, w_a2, b_a2) = params
    bf16 = jnp.bfloat16

    din = state_dim + action_dim
    din_pad = _round_up(din, 128)

    # Block-diagonal fused input weight over lane-padded cat(state, action): (din_pad, 384).
    w_in = jnp.zeros((din_pad, 384), jnp.float32)
    w_in = w_in.at[:state_dim, :256].set(w_fcs1)
    w_in = w_in.at[state_dim:din, 256:].set(w_fca1)
    b_in = jnp.concatenate([b_fcs1, b_fca1], axis=-1)                     # (1, 384)

    # Fused V1/A1 mid layer, split by input source.  Output cols 0..127 = V branch,
    # 128..255 = A branch.  w_a1 rows 0..127 multiply s2, rows 128..255 multiply a1.
    w_mid_s = jnp.concatenate([w_v1, w_a1[:128]], axis=1)                 # (128, 256) for s2
    w_mid_a = jnp.concatenate([jnp.zeros((128, 128), jnp.float32),
                               w_a1[128:]], axis=1)                       # (128, 256) for a1
    b_mid = jnp.concatenate([b_v1, b_a1], axis=-1)                        # (1, 256)

    # Fused head weight permuted to match (v_act | a_act): (256, 2); col0 = A, col1 = V.
    w_head = jnp.zeros((256, 2), jnp.float32)
    w_head = w_head.at[:128, 1].set(w_v2[:, 0])
    w_head = w_head.at[128:, 0].set(w_a2[:, 0])
    b_head = jnp.concatenate([b_a2, b_v2], axis=-1)                       # (1, 2)

    return (w_in.astype(bf16), b_in,
            w_fcs2.astype(bf16), b_fcs2,
            w_mid_s.astype(bf16), w_mid_a.astype(bf16), b_mid,
            w_head.astype(bf16), b_head)


def qnetwork_forward(state, action, kparams, tile_b=512):
    B, state_dim = state.shape
    action_dim = action.shape[1]
    din = state_dim + action_dim
    din_pad = _round_up(din, 128)   # lane-dense input rows

    # Concat + bf16 cast + lane padding done once in the wrapper.
    x = jnp.concatenate([state, action], axis=-1).astype(jnp.bfloat16)
    if din_pad != din:
        x = jnp.pad(x, ((0, 0), (0, din_pad - din)))

    # Batch tiling: multiples of 16 (bf16 sublane packing).  For B > 16 force
    # at least 2 grid steps so the "parallel" axis spans both TCs on v7x.
    if B <= 16:
        tb = 16
    else:
        tb = min(tile_b, max(16, _round_up(_cdiv(B, 2), 16)))
    pad_b = _round_up(B, tb)
    if pad_b != B:
        x = jnp.pad(x, ((0, pad_b - B), (0, 0)))
    nb = pad_b // tb

    (w_in, b_in, w_s2, b_s2, w_mid_s, w_mid_a, b_mid, w_head, b_head) = kparams

    def whole(arr):
        # Full-array block, constant index -> stays resident in VMEM across the grid.
        return pl.BlockSpec(arr.shape, lambda i: (0, 0))

    # Advisory cost estimate so XLA schedules surrounding ops around this tiny kernel.
    flops_per_row = 2 * (din_pad * 384 + 256 * 128 + 2 * 128 * 256 + 256 * 2)
    weight_bytes = sum(int(np.prod(a.shape)) * a.dtype.itemsize for a in kparams)
    cost = pl.CostEstimate(
        flops=pad_b * flops_per_row,
        transcendentals=0,
        bytes_accessed=int(x.size) * x.dtype.itemsize + weight_bytes + pad_b * 2 * 4,
    )

    out = pl.pallas_call(
        qnet_kernel,
        out_shape=jax.ShapeDtypeStruct((pad_b, 2), jnp.float32),
        grid=(nb,),
        in_specs=[pl.BlockSpec((tb, din_pad), lambda i: (i, 0)),
                  whole(w_in), whole(b_in),
                  whole(w_s2), whole(b_s2),
                  whole(w_mid_s), whole(w_mid_a), whole(b_mid),
                  whole(w_head), whole(b_head)],
        out_specs=pl.BlockSpec((tb, 2), lambda i: (i, 0)),
        compiler_params=pltpu.CompilerParams(dimension_semantics=("parallel",)),
        cost_estimate=cost,
    )(x, w_in, b_in, w_s2, b_s2, w_mid_s, w_mid_a, b_mid, w_head, b_head)

    A = out[:B, 0:1]
    Q = out[:B, 1:2]
    return A, Q


def init_params(key, state_dim, action_dim):
    """Deterministic init mirroring the PyTorch module (weights in (in, out) layout).

    fanin_init: v = 1/sqrt(size[0]) where torch size = (out_features, in_features),
    i.e. scale 1/sqrt(out_features); nn.Linear default bias init is
    uniform(-1/sqrt(in_features), 1/sqrt(in_features)).
    """
    def wkey():
        nonlocal key
        key, sub = jax.random.split(key)
        return sub

    def fanin_w(in_f, out_f):
        v = 1.0 / np.sqrt(out_f)
        return jax.random.uniform(wkey(), (in_f, out_f), jnp.float32, -v, v)

    def eps_w(in_f, out_f):
        return jax.random.uniform(wkey(), (in_f, out_f), jnp.float32, -EPS, EPS)

    def bias(in_f, out_f):
        v = 1.0 / np.sqrt(in_f)
        return jax.random.uniform(wkey(), (1, out_f), jnp.float32, -v, v)

    w_fcs1 = fanin_w(state_dim, 256);  b_fcs1 = bias(state_dim, 256)
    w_fcs2 = fanin_w(256, 128);        b_fcs2 = bias(256, 128)
    w_fca1 = fanin_w(action_dim, 128); b_fca1 = bias(action_dim, 128)
    w_v1   = fanin_w(128, 128);        b_v1   = bias(128, 128)
    w_v2   = eps_w(128, 1);            b_v2   = bias(128, 1)
    w_a1   = fanin_w(256, 128);        b_a1   = bias(256, 128)   # rows 0..127: s2, 128..255: a1
    w_a2   = eps_w(128, 1);            b_a2   = bias(128, 1)

    return (w_fcs1, b_fcs1, w_fcs2, b_fcs2, w_fca1, b_fca1,
            w_v1, b_v1, w_v2, b_v2, w_a1, b_a1, w_a2, b_a2)


def reference_forward(state, action, params):
    """Pure-JAX reference of QNetwork.forward, emulating the kernel's bf16 matmul inputs."""
    (w_fcs1, b_fcs1, w_fcs2, b_fcs2, w_fca1, b_fca1,
     w_v1, b_v1, w_v2, b_v2, w_a1, b_a1, w_a2, b_a2) = params
    bf16, f32 = jnp.bfloat16, jnp.float32

    def mm(a, w):
        return jnp.dot(a.astype(bf16), w.astype(bf16), preferred_element_type=f32)

    relu = lambda t: jnp.maximum(t, 0.0)
    s1 = relu(mm(state, w_fcs1) + b_fcs1)
    s2 = relu(mm(s1, w_fcs2) + b_fcs2)
    a1 = relu(mm(action, w_fca1) + b_fca1)
    v = mm(relu(mm(s2, w_v1) + b_v1), w_v2) + b_v2
    x = jnp.concatenate([s2, a1], axis=1)
    adv = mm(relu(mm(x, w_a1) + b_a1), w_a2) + b_a2
    return adv, v * v


if __name__ == "__main__":
    batch, state_dim, action_dim = 8, 16, 8

    key = jax.random.PRNGKey(0)
    k_state, k_action, k_params = jax.random.split(key, 3)

    state = jax.random.normal(k_state, (batch, state_dim), jnp.float32)
    action = jax.random.normal(k_action, (batch, action_dim), jnp.float32)
    params = init_params(k_params, state_dim, action_dim)
    kparams = prepare_params(params, state_dim, action_dim)

    A, Q = qnetwork_forward(state, action, kparams)
    A, Q = jax.block_until_ready((A, Q))

    A_ref, Q_ref = reference_forward(state, action, params)
    assert A.shape == (batch, 1) and Q.shape == (batch, 1)
    np.testing.assert_allclose(np.asarray(A), np.asarray(A_ref), rtol=1e-2, atol=1e-4)
    np.testing.assert_allclose(np.asarray(Q), np.asarray(Q_ref), rtol=1e-2, atol=1e-4)

    print("KERNEL_OK")
</pallas_src>

<mosaic_0001>
module attributes {stable_mosaic.version = 11 : i64} {
  func.func @qnet_kernel(%arg0: i32, %arg1: memref<16x128xbf16, #tpu.memory_space<vmem>>, %arg2: memref<128x384xbf16, #tpu.memory_space<vmem>>, %arg3: memref<1x384xf32, #tpu.memory_space<vmem>>, %arg4: memref<256x128xbf16, #tpu.memory_space<vmem>>, %arg5: memref<1x128xf32, #tpu.memory_space<vmem>>, %arg6: memref<128x256xbf16, #tpu.memory_space<vmem>>, %arg7: memref<128x256xbf16, #tpu.memory_space<vmem>>, %arg8: memref<1x256xf32, #tpu.memory_space<vmem>>, %arg9: memref<256x2xbf16, #tpu.memory_space<vmem>>, %arg10: memref<1x2xf32, #tpu.memory_space<vmem>>, %arg11: memref<16x2xf32, #tpu.memory_space<vmem>>) attributes {dimension_semantics = [#tpu.dimension_semantics<parallel>], iteration_bounds = array<i64: 1>, scalar_prefetch = 0 : i64, scratch_operands = 0 : i64, tpu.core_type = #tpu.core_type<tc>, window_params = [{transform_indices = @transform_0, window_bounds = array<i64: 16, 128>}, {pipeline_mode = #tpu.pipeline_mode<synchronous>, transform_indices = @transform_1, window_bounds = array<i64: 128, 384>}, {pipeline_mode = #tpu.pipeline_mode<synchronous>, transform_indices = @transform_2, window_bounds = array<i64: 1, 384>}, {pipeline_mode = #tpu.pipeline_mode<synchronous>, transform_indices = @transform_3, window_bounds = array<i64: 256, 128>}, {pipeline_mode = #tpu.pipeline_mode<synchronous>, transform_indices = @transform_4, window_bounds = array<i64: 1, 128>}, {pipeline_mode = #tpu.pipeline_mode<synchronous>, transform_indices = @transform_5, window_bounds = array<i64: 128, 256>}, {pipeline_mode = #tpu.pipeline_mode<synchronous>, transform_indices = @transform_6, window_bounds = array<i64: 128, 256>}, {pipeline_mode = #tpu.pipeline_mode<synchronous>, transform_indices = @transform_7, window_bounds = array<i64: 1, 256>}, {pipeline_mode = #tpu.pipeline_mode<synchronous>, transform_indices = @transform_8, window_bounds = array<i64: 256, 2>}, {pipeline_mode = #tpu.pipeline_mode<synchronous>, transform_indices = @transform_9, window_bounds = array<i64: 1, 2>}, {transform_indices = @transform_10, window_bounds = array<i64: 16, 2>}]} {
    %c0 = arith.constant 0 : index
    %c0_0 = arith.constant 0 : index
    %0 = vector.load %arg1[%c0, %c0_0] : memref<16x128xbf16, #tpu.memory_space<vmem>>, vector<16x128xbf16>
    %c0_1 = arith.constant 0 : index
    %c0_2 = arith.constant 0 : index
    %1 = vector.load %arg2[%c0_1, %c0_2] : memref<128x384xbf16, #tpu.memory_space<vmem>>, vector<128x384xbf16>
    %cst = arith.constant dense<0.000000e+00> : vector<16x384xf32>
    %2 = tpu.matmul %0, %1, %cst {dimension_numbers = #tpu.dot_dimension_numbers<[1], [0], [0], [1], [0, 0, 1, 1], [], []>} : vector<16x128xbf16>, vector<128x384xbf16>, vector<16x384xf32> -> vector<16x384xf32>
    %c0_3 = arith.constant 0 : index
    %c0_4 = arith.constant 0 : index
    %3 = vector.load %arg3[%c0_3, %c0_4] : memref<1x384xf32, #tpu.memory_space<vmem>>, vector<1x384xf32>
    %4 = vector.broadcast %3 : vector<1x384xf32> to vector<16x384xf32>
    %5 = arith.addf %2, %4 : vector<16x384xf32>
    %cst_5 = arith.constant 0.000000e+00 : f32
    %6 = vector.broadcast %cst_5 : f32 to vector<16x384xf32>
    %7 = arith.maximumf %5, %6 : vector<16x384xf32>
    %8 = arith.truncf %7 : vector<16x384xf32> to vector<16x384xbf16>
    %9 = vector.extract_strided_slice %8 {offsets = [0, 0], sizes = [16, 256], strides = [1, 1]} : vector<16x384xbf16> to vector<16x256xbf16>
    %10 = vector.extract_strided_slice %8 {offsets = [0, 256], sizes = [16, 128], strides = [1, 1]} : vector<16x384xbf16> to vector<16x128xbf16>
    %c0_6 = arith.constant 0 : index
    %c0_7 = arith.constant 0 : index
    %11 = vector.load %arg4[%c0_6, %c0_7] : memref<256x128xbf16, #tpu.memory_space<vmem>>, vector<256x128xbf16>
    %cst_8 = arith.constant dense<0.000000e+00> : vector<16x128xf32>
    %12 = tpu.matmul %9, %11, %cst_8 {dimension_numbers = #tpu.dot_dimension_numbers<[1], [0], [0], [1], [0, 0, 1, 1], [], []>} : vector<16x256xbf16>, vector<256x128xbf16>, vector<16x128xf32> -> vector<16x128xf32>
    %c0_9 = arith.constant 0 : index
    %c0_10 = arith.constant 0 : index
    %13 = vector.load %arg5[%c0_9, %c0_10] : memref<1x128xf32, #tpu.memory_space<vmem>>, vector<1x128xf32>
    %14 = vector.broadcast %13 : vector<1x128xf32> to vector<16x128xf32>
    %15 = arith.addf %12, %14 : vector<16x128xf32>
    %cst_11 = arith.constant 0.000000e+00 : f32
    %16 = vector.broadcast %cst_11 : f32 to vector<16x128xf32>
    %17 = arith.maximumf %15, %16 : vector<16x128xf32>
    %18 = arith.truncf %17 : vector<16x128xf32> to vector<16x128xbf16>
    %c0_12 = arith.constant 0 : index
    %c0_13 = arith.constant 0 : index
    %19 = vector.load %arg6[%c0_12, %c0_13] : memref<128x256xbf16, #tpu.memory_space<vmem>>, vector<128x256xbf16>
    %cst_14 = arith.constant dense<0.000000e+00> : vector<16x256xf32>
    %20 = tpu.matmul %18, %19, %cst_14 {dimension_numbers = #tpu.dot_dimension_numbers<[1], [0], [0], [1], [0, 0, 1, 1], [], []>} : vector<16x128xbf16>, vector<128x256xbf16>, vector<16x256xf32> -> vector<16x256xf32>
    %c0_15 = arith.constant 0 : index
    %c0_16 = arith.constant 0 : index
    %21 = vector.load %arg7[%c0_15, %c0_16] : memref<128x256xbf16, #tpu.memory_space<vmem>>, vector<128x256xbf16>
    %cst_17 = arith.constant dense<0.000000e+00> : vector<16x256xf32>
    %22 = tpu.matmul %10, %21, %cst_17 {dimension_numbers = #tpu.dot_dimension_numbers<[1], [0], [0], [1], [0, 0, 1, 1], [], []>} : vector<16x128xbf16>, vector<128x256xbf16>, vector<16x256xf32> -> vector<16x256xf32>
    %23 = arith.addf %20, %22 : vector<16x256xf32>
    %c0_18 = arith.constant 0 : index
    %c0_19 = arith.constant 0 : index
    %24 = vector.load %arg8[%c0_18, %c0_19] : memref<1x256xf32, #tpu.memory_space<vmem>>, vector<1x256xf32>
    %25 = vector.broadcast %24 : vector<1x256xf32> to vector<16x256xf32>
    %26 = arith.addf %23, %25 : vector<16x256xf32>
    %cst_20 = arith.constant 0.000000e+00 : f32
    %27 = vector.broadcast %cst_20 : f32 to vector<16x256xf32>
    %28 = arith.maximumf %26, %27 : vector<16x256xf32>
    %29 = arith.truncf %28 : vector<16x256xf32> to vector<16x256xbf16>
    %c0_21 = arith.constant 0 : index
    %c0_22 = arith.constant 0 : index
    %30 = vector.load %arg9[%c0_21, %c0_22] : memref<256x2xbf16, #tpu.memory_space<vmem>>, vector<256x2xbf16>
    %cst_23 = arith.constant dense<0.000000e+00> : vector<16x2xf32>
    %31 = tpu.matmul %29, %30, %cst_23 {dimension_numbers = #tpu.dot_dimension_numbers<[1], [0], [0], [1], [0, 0, 1, 1], [], []>} : vector<16x256xbf16>, vector<256x2xbf16>, vector<16x2xf32> -> vector<16x2xf32>
    %c0_24 = arith.constant 0 : index
    %c0_25 = arith.constant 0 : index
    %32 = vector.load %arg10[%c0_24, %c0_25] : memref<1x2xf32, #tpu.memory_space<vmem>>, vector<1x2xf32>
    %33 = vector.broadcast %32 : vector<1x2xf32> to vector<16x2xf32>
    %34 = arith.addf %31, %33 : vector<16x2xf32>
    %35 = tpu.iota {dimensions = array<i32: 1>} : vector<16x2xi32>
    %c1_i32 = arith.constant 1 : i32
    %36 = vector.broadcast %c1_i32 : i32 to vector<16x2xi32>
    %37 = arith.cmpi eq, %35, %36 : vector<16x2xi32>
    %38 = arith.mulf %34, %34 : vector<16x2xf32>
    %39 = arith.select %37, %38, %34 : vector<16x2xi1>, vector<16x2xf32>
    %c0_26 = arith.constant 0 : index
    %c0_27 = arith.constant 0 : index
    %40 = vector.load %arg11[%c0_26, %c0_27] : memref<16x2xf32, #tpu.memory_space<vmem>>, vector<16x2xf32>
    tpu.vector_store %arg11[%c0_26, %c0_27], %39 {strides = array<i32>} : memref<16x2xf32, #tpu.memory_space<vmem>>, vector<16x2xf32>,
    return
  }
  func.func @transform_0(%arg0: i32) -> (i32, i32) {
    %c0_i32 = arith.constant 0 : i32
    %c0_i32_0 = arith.constant 0 : i32
    return %arg0, %c0_i32 : i32, i32
  }
  func.func @transform_1(%arg0: i32) -> (i32, i32) {
    %c0_i32 = arith.constant 0 : i32
    %c0_i32_0 = arith.constant 0 : i32
    %c0_i32_1 = arith.constant 0 : i32
    return %c0_i32, %c0_i32_0 : i32, i32
  }
  func.func @transform_2(%arg0: i32) -> (i32, i32) {
    %c0_i32 = arith.constant 0 : i32
    %c0_i32_0 = arith.constant 0 : i32
    %c0_i32_1 = arith.constant 0 : i32
    return %c0_i32, %c0_i32_0 : i32, i32
  }
  func.func @transform_3(%arg0: i32) -> (i32, i32) {
    %c0_i32 = arith.constant 0 : i32
    %c0_i32_0 = arith.constant 0 : i32
    %c0_i32_1 = arith.constant 0 : i32
    return %c0_i32, %c0_i32_0 : i32, i32
  }
  func.func @transform_4(%arg0: i32) -> (i32, i32) {
    %c0_i32 = arith.constant 0 : i32
    %c0_i32_0 = arith.constant 0 : i32
    %c0_i32_1 = arith.constant 0 : i32
    return %c0_i32, %c0_i32_0 : i32, i32
  }
  func.func @transform_5(%arg0: i32) -> (i32, i32) {
    %c0_i32 = arith.constant 0 : i32
    %c0_i32_0 = arith.constant 0 : i32
    %c0_i32_1 = arith.constant 0 : i32
    return %c0_i32, %c0_i32_0 : i32, i32
  }
  func.func @transform_6(%arg0: i32) -> (i32, i32) {
    %c0_i32 = arith.constant 0 : i32
    %c0_i32_0 = arith.constant 0 : i32
    %c0_i32_1 = arith.constant 0 : i32
    return %c0_i32, %c0_i32_0 : i32, i32
  }
  func.func @transform_7(%arg0: i32) -> (i32, i32) {
    %c0_i32 = arith.constant 0 : i32
    %c0_i32_0 = arith.constant 0 : i32
    %c0_i32_1 = arith.constant 0 : i32
    return %c0_i32, %c0_i32_0 : i32, i32
  }
  func.func @transform_8(%arg0: i32) -> (i32, i32) {
    %c0_i32 = arith.constant 0 : i32
    %c0_i32_0 = arith.constant 0 : i32
    %c0_i32_1 = arith.constant 0 : i32
    return %c0_i32, %c0_i32_0 : i32, i32
  }
  func.func @transform_9(%arg0: i32) -> (i32, i32) {
    %c0_i32 = arith.constant 0 : i32
    %c0_i32_0 = arith.constant 0 : i32
    %c0_i32_1 = arith.constant 0 : i32
    return %c0_i32, %c0_i32_0 : i32, i32
  }
  func.func @transform_10(%arg0: i32) -> (i32, i32) {
    %c0_i32 = arith.constant 0 : i32
    %c0_i32_0 = arith.constant 0 : i32
    return %arg0, %c0_i32 : i32, i32
  }
}

</mosaic_0001>

<bundles_post_ra>
// kernel: tpu_custom_call.1
= control target key start
LH: loop header
LB: loop body
LE: loop exit
PB: predicated region body
PF: predicated region fallthrough
CT: control target
= control target key end

     0   :  { %15 = vsyncpa [#allocation3], 0  ;;  %s1638_s0 = inlined_call_operand.vmem [shape: bf16[16,128], index: 0, kind: input, shape index: {}]   ;;  %s1639_s1 = inlined_call_operand.hbm [shape: bf16[128,384], index: 1, kind: input, shape index: {}]   ;;  %s1640_s2 = inlined_call_operand.vmem [shape: f32[1,384], index: 2, kind: input, shape index: {}]   ;;  %s1641_s3 = inlined_call_operand.vmem [shape: bf16[256,128], index: 3, kind: input, shape index: {}]   ;;  %s1642_s4 = inlined_call_operand.vmem [shape: f32[1,128], index: 4, kind: input, shape index: {}]   ;;  %s1643_s5 = inlined_call_operand.hbm [shape: bf16[128,256], index: 5, kind: input, shape index: {}]   ;;  %s1644_s6 = inlined_call_operand.hbm [shape: bf16[128,256], index: 6, kind: input, shape index: {}]   ;;  %s1645_s7 = inlined_call_operand.vmem [shape: f32[1,256], index: 7, kind: input, shape index: {}]   ;;  %s1646_s8 = inlined_call_operand.vmem [shape: bf16[256,2], index: 8, kind: input, shape index: {}]   ;;  %s1647_s9 = inlined_call_operand.vmem [shape: f32[1,2], index: 9, kind: input, shape index: {}]   ;;  %s1648_s10 = inlined_call_operand.vmem [shape: f32[16,2], index: 10, kind: output, shape index: {}]  }
   0x1   :  { %16 = vsyncpa [#allocation5], 0  ;;  %s1387_s13 = smov [#allocation4]   ;;  %s1317_s17 = scalar_lea.hbm %s1643_s5, 2048 }
   0x2   :  { %s42_s14 = sshll.u32 %s1387_s13, 4  ;;  %p1318_p0 = scmp.ne.s32.totalorder %s1643_s5, %s1317_s17  ;;  %s43_s14 = int_to_ptr.vmem [resolvable:$true] %s42_s14 }
   0x3   :  { %p1321_p1 = scmp.lt.u32.totalorder %s1317_s17, %s1643_s5 }
   0x5   :  { %p1323_p2 = pnand %p1321_p1, %p1318_p0 }
   0x7   :  { %1326 = shalt.err (!%p1323_p2)
}
   0x8   :  { %s1327_s22 = scalar_lea.vmem %s43_s14, 2048  ;;  %p1332_p4 = scmp.lt.s32.totalorder %s43_s14, %s43_s14 }
   0x9   :  { %p1328_p3 = scmp.ne.s32.totalorder %s43_s14, %s1327_s22  ;;  %p1333_p5 = scmp.lt.s32.totalorder %s1327_s22, %s1327_s22 }
   0xb   :  { %p1334_p6 = por %p1333_p5, %p1332_p4 }
   0xd   :  { %p1335_p7 = pnand %p1334_p6, %p1328_p3 }
   0xf   :  { %1338 = shalt.err (!%p1335_p7)
}
  0x10   :  { %s1388_s23 = smov 128   ;;  %s1389_s24 = smov 8  }
  0x11   :  { %48 = dma.hbm_to_vmem [thread:$0]  %s1643_s5, 2048, %s43_s14, [#allocation5], %s1388_s23, %s1388_s23, %s1389_s24  }
  0x12   :  { %s1390_s27 = smov [#allocation2]   ;;  %s1339_s11 = scalar_lea.hbm %s1639_s1, 3072 }
  0x13   :  { %s24_s28 = sshll.u32 %s1390_s27, 4  ;;  %p1340_p8 = scmp.ne.s32.totalorder %s1639_s1, %s1339_s11  ;;  %s25_s28 = int_to_ptr.vmem [resolvable:$true] %s24_s28 }
  0x14   :  { %p1343_p9 = scmp.lt.u32.totalorder %s1339_s11, %s1639_s1 }
  0x16   :  { %p1345_p10 = pnand %p1343_p9, %p1340_p8 }
  0x18   :  { %1348 = shalt.err (!%p1345_p10)
}
  0x19   :  { %s1349_s17 = scalar_lea.vmem %s25_s28, 3072  ;;  %p1354_p12 = scmp.lt.s32.totalorder %s25_s28, %s25_s28 }
  0x1a   :  { %p1350_p11 = scmp.ne.s32.totalorder %s25_s28, %s1349_s17  ;;  %p1355_p13 = scmp.lt.s32.totalorder %s1349_s17, %s1349_s17 }
  0x1c   :  { %p1356_p0 = por %p1355_p13, %p1354_p12 }
  0x1e   :  { %p1357_p1 = pnand %p1356_p0, %p1350_p11 }
  0x20   :  { %1360 = shalt.err (!%p1357_p1)
}
  0x21   :  { %s1391_s5 = smov 192   ;;  %s1392_s14 = smov 12  }
  0x22   :  { %30 = dma.hbm_to_vmem [thread:$0]  %s1639_s1, 3072, %s25_s28, [#allocation3], %s1391_s5, %s1391_s5, %s1392_s14  }
  0x23   :  { %s1393_s20 = smov [#allocation6]   ;;  %s1361_s26 = scalar_lea.hbm %s1644_s6, 2048 }
  0x24   :  { %s54_s21 = sshll.u32 %s1393_s20, 4  ;;  %p1362_p2 = scmp.ne.s32.totalorder %s1644_s6, %s1361_s26  ;;  %s55_s21 = int_to_ptr.vmem [resolvable:$true] %s54_s21 }
  0x25   :  { %p1365_p3 = scmp.lt.u32.totalorder %s1361_s26, %s1644_s6 }
  0x27   :  { %p1367_p4 = pnand %p1365_p3, %p1362_p2 }
  0x29   :  { %1370 = shalt.err (!%p1367_p4)
}
  0x2a   :  { %s1371_s12 = scalar_lea.vmem %s55_s21, 2048  ;;  %p1376_p6 = scmp.lt.s32.totalorder %s55_s21, %s55_s21 }
  0x2b   :  { %p1372_p5 = scmp.ne.s32.totalorder %s55_s21, %s1371_s12  ;;  %p1377_p7 = scmp.lt.s32.totalorder %s1371_s12, %s1371_s12 }
  0x2d   :  { %p1378_p8 = por %p1377_p7, %p1376_p6 }
  0x2f   :  { %p1379_p9 = pnand %p1378_p8, %p1372_p5 }
  0x31   :  { %1382 = shalt.err (!%p1379_p9)
}
  0x32   :  { %60 = dma.hbm_to_vmem [thread:$0]  %s1644_s6, 2048, %s55_s21, [#allocation5], %s1388_s23, %s1388_s23, %s1389_s24  }
  0x33   :  { %1383 = dma.done.wait [#allocation3], 3072  }
  0x34   :  { %1384 = vsyncadd [#allocation3], 4294964224 }
  0x35   :  { %1385 = dma.done.wait [#allocation5], 4096  }
  0x36   :  { %1386 = vsyncadd [#allocation5], 4294963200  ;;  %v1394_v0 = vmov 0   ;;  %v1395_v1 = vmov 0.0   ;;  %vm1396_vm0 = vmmov 0   ;;  %v1228_v23 = vld [vmem:[%s1638_s0] sm:$0xff]   ;;  %v113_v60 = vlaneseq }
  0x37   :  { %294 = vmatprep.mubr.bf16.mxu0 %v1394_v0  ;;  %1170 = vmatprep.subr.bf16.mxu1 %v1395_v1  ;;  %v1204_v2 = vld [vmem:[#allocation2 + $0x4] ss:$12 sps:$4 sm:$0xff]   ;;  %v1206_v3 = vld [vmem:[#allocation2] ss:$12 sps:$4 sm:$0xff]   ;;  %v1207_v4 = vld [vmem:[#allocation2 + $0x1c] ss:$12 sps:$4 sm:$0xff]  }
  0x38   :  { %1186 = vmatprep.mubr.msk.bf16.mxu1 %vm1396_vm0, %v1395_v1  ;;  %262 = vmatprep.subr.bf16.mxu0 %v1204_v2  ;;  %v1209_v5 = vld [vmem:[#allocation2 + $0x18] ss:$12 sps:$4 sm:$0xff]   ;;  %v1210_v6 = vld [vmem:[#allocation2 + $0x34] ss:$12 sps:$4 sm:$0xff]   ;;  %v1212_v7 = vld [vmem:[#allocation2 + $0x30] ss:$12 sps:$4 sm:$0xff]  }
  0x39   :  { %263 = vmatpush1.bf16.msra.mxu0 %v1206_v3  ;;  %v1213_v8 = vld [vmem:[#allocation2 + $0x4c] ss:$12 sps:$4 sm:$0xff]   ;;  %v1215_v9 = vld [vmem:[#allocation2 + $0x48] ss:$12 sps:$4 sm:$0xff]   ;;  %v1216_v10 = vld [vmem:[#allocation2 + $0x64] ss:$12 sps:$4 sm:$0xff]  }
  0x3a   :  { %264 = vmatprep.subr.bf16.mxu0 %v1207_v4  ;;  %v1229_v11 = vld [vmem:[#allocation2 + $0x8] ss:$12 sps:$4 sm:$0xff]   ;;  %v1230_v12 = vld [vmem:[#allocation2 + $0x20] ss:$12 sps:$4 sm:$0xff]   ;;  %v1231_v15 = vld [vmem:[#allocation2 + $0x38] ss:$12 sps:$4 sm:$0xff]  }
  0x3b   :  { %1171 = vmatpush3.bf16.msra.mxu1 %v1229_v11  ;;  %v1218_v13 = vld [vmem:[#allocation2 + $0x60] ss:$12 sps:$4 sm:$0xff]   ;;  %v1219_v14 = vld [vmem:[#allocation2 + $0x7c] ss:$12 sps:$4 sm:$0xff]   ;;  %v1221_v16 = vld [vmem:[#allocation2 + $0x78] ss:$12 sps:$4 sm:$0xff]  }
  0x3c   :  { %1172 = vmatprep.subr.bf16.mxu1 %v1395_v1  ;;  %v1222_v17 = vld [vmem:[#allocation2 + $0x94] ss:$12 sps:$4 sm:$0xff]   ;;  %v1232_v18 = vld [vmem:[#allocation2 + $0x50] ss:$12 sps:$4 sm:$0xff]   ;;  %v1225_v20 = vld [vmem:[#allocation2 + $0xac] ss:$12 sps:$4 sm:$0xff]  }
  0x3d   :  { %265 = vmatpush1.bf16.msra.mxu0 %v1209_v5  ;;  %v1224_v19 = vld [vmem:[#allocation2 + $0x90] ss:$12 sps:$4 sm:$0xff]   ;;  %v1233_v21 = vld [vmem:[#allocation2 + $0x68] ss:$12 sps:$4 sm:$0xff]   ;;  %v1237_v24 = vld [vmem:[%s1641_s3 + $0x40] sm:$0xff]   ;;  %v1557_v61 = vshrl.u32 %v113_v60, 7 }
  0x3e   :  { %266 = vmatprep.subr.bf16.mxu0 %v1210_v6  ;;  %v1227_v22 = vld [vmem:[#allocation2 + $0xa8] ss:$12 sps:$4 sm:$0xff]   ;;  %v1234_v25 = vld [vmem:[#allocation2 + $0x80] ss:$12 sps:$4 sm:$0xff]   ;;  %v1235_v28 = vld [vmem:[#allocation2 + $0x98] ss:$12 sps:$4 sm:$0xff]  }
  0x3f   :  { %1173 = vmatpush3.bf16.msra.mxu1 %v1230_v12  ;;  %v1238_v26 = vld [vmem:[%s1641_s3] sm:$0xff]   ;;  %v1239_v27 = vld [vmem:[%s1641_s3 + $0x48] sm:$0xff]   ;;  %v1241_v30 = vld [vmem:[%s1641_s3 + $0x50] sm:$0xff]   ;;  %v115_v62 = vsub.s32 0, %v1557_v61  ;;  %v123_v12 = vsub.s32 2, %v1557_v61  ;;  %vm1017_vm2 = vcmask 15360  }
  0x40   :  { %1174 = vmatprep.subr.bf16.mxu1 %v1395_v1  ;;  %v1240_v29 = vld [vmem:[%s1641_s3 + $0x8] sm:$0xff]   ;;  %v1236_v31 = vld [vmem:[#allocation2 + $0xb0] ss:$12 sps:$4 sm:$0xff]   ;;  %v1245_v35 = vld [vmem:[%s1641_s3 + $0x60] sm:$0xff]  }
  0x41   :  { %267 = vmatpush1.bf16.msra.mxu0 %v1212_v7  ;;  %v1242_v32 = vld [vmem:[%s1641_s3 + $0x10] sm:$0xff]   ;;  %v1243_v33 = vld [vmem:[%s1641_s3 + $0x58] sm:$0xff]   ;;  %v1246_v36 = vld [vmem:[%s1641_s3 + $0x20] sm:$0xff]  }
  0x42   :  { %268 = vmatprep.subr.bf16.mxu0 %v1213_v8  ;;  %v1244_v34 = vld [vmem:[%s1641_s3 + $0x18] sm:$0xff]   ;;  %v1247_v37 = vld [vmem:[%s1641_s3 + $0x68] sm:$0xff]   ;;  %v1249_v39 = vld [vmem:[%s1641_s3 + $0x70] sm:$0xff]  }
  0x43   :  { %1175 = vmatpush3.bf16.msra.mxu1 %v1231_v15  ;;  %v1248_v38 = vld [vmem:[%s1641_s3 + $0x28] sm:$0xff]   ;;  %v1250_v40 = vld [vmem:[%s1641_s3 + $0x30] sm:$0xff]   ;;  %v1251_v41 = vld [vmem:[%s1641_s3 + $0x78] sm:$0xff]  }
  0x44   :  { %1176 = vmatprep.subr.bf16.mxu1 %v1395_v1  ;;  %v1252_v42 = vld [vmem:[%s1641_s3 + $0x38] sm:$0xff]   ;;  %v1253_v43 = vld [vmem:[#allocation6] ss:$8 sps:$4 sm:$0xff]   ;;  %v1255_v44 = vld [vmem:[#allocation6 + $0x4] ss:$8 sps:$4 sm:$0xff]  }
  0x45   :  { %269 = vmatpush1.bf16.msra.mxu0 %v1215_v9  ;;  %v1258_v45 = vld [vmem:[#allocation6 + $0x14] ss:$8 sps:$4 sm:$0xff]   ;;  %v1256_v46 = vld [vmem:[#allocation6 + $0x10] ss:$8 sps:$4 sm:$0xff]   ;;  %v1261_v47 = vld [vmem:[#allocation6 + $0x24] ss:$8 sps:$4 sm:$0xff]  }
  0x46   :  { %270 = vmatprep.subr.bf16.mxu0 %v1216_v10  ;;  %v1259_v48 = vld [vmem:[#allocation6 + $0x20] ss:$8 sps:$4 sm:$0xff]   ;;  %v1264_v49 = vld [vmem:[#allocation6 + $0x34] ss:$8 sps:$4 sm:$0xff]   ;;  %v1262_v50 = vld [vmem:[#allocation6 + $0x30] ss:$8 sps:$4 sm:$0xff]  }
  0x47   :  { %1177 = vmatpush3.bf16.msra.mxu1 %v1232_v18  ;;  %v1267_v51 = vld [vmem:[#allocation6 + $0x44] ss:$8 sps:$4 sm:$0xff]   ;;  %v1265_v52 = vld [vmem:[#allocation6 + $0x40] ss:$8 sps:$4 sm:$0xff]   ;;  %v1270_v53 = vld [vmem:[#allocation6 + $0x54] ss:$8 sps:$4 sm:$0xff]  }
  0x48   :  { %1178 = vmatprep.subr.bf16.mxu1 %v1395_v1  ;;  %v1268_v54 = vld [vmem:[#allocation6 + $0x50] ss:$8 sps:$4 sm:$0xff]   ;;  %v1273_v55 = vld [vmem:[#allocation6 + $0x64] ss:$8 sps:$4 sm:$0xff]   ;;  %v1271_v56 = vld [vmem:[#allocation6 + $0x60] ss:$8 sps:$4 sm:$0xff]  }
  0x49   :  { %271 = vmatpush1.bf16.msra.mxu0 %v1218_v13  ;;  %v1276_v57 = vld [vmem:[#allocation6 + $0x74] ss:$8 sps:$4 sm:$0xff]   ;;  %v1274_v58 = vld [vmem:[#allocation6 + $0x70] ss:$8 sps:$4 sm:$0xff]   ;;  %v1279_v59 = vld [vmem:[#allocation4 + $0x4] ss:$8 sps:$4 sm:$0xff]  }
  0x4a   :  { %272 = vmatprep.subr.bf16.mxu0 %v1219_v14  ;;  %v111_v63 = vld [vmem:[%s1640_s2] sm:$0x7] }
  0x4b   :  { %1179 = vmatpush3.bf16.msra.mxu1 %v1233_v21  ;;  %v116_v2 = vrot.slane %v111_v63, %v115_v62 }
  0x4c   :  { %1180 = vmatprep.subr.bf16.mxu1 %v1395_v1 }
  0x4d   :  { %273 = vmatpush1.bf16.msra.mxu0 %v1221_v16 }
  0x4e   :  { %274 = vmatprep.subr.bf16.mxu0 %v1222_v17 }
  0x4f   :  { %1181 = vmatpush3.bf16.msra.mxu1 %v1234_v25 }
  0x50   :  { %1182 = vmatprep.subr.bf16.mxu1 %v1395_v1 }
  0x51   :  { %275 = vmatpush1.bf16.msra.mxu0 %v1224_v19  ;;  %v124_v19 = vrot.slane %v111_v63, %v123_v12  ;;  %v812_v12 = vld [vmem:[%s1645_s7] sm:$0x3] }
  0x52   :  { %276 = vmatprep.subr.bf16.mxu0 %v1225_v20 }
  0x53   :  { %1183 = vmatpush3.bf16.msra.mxu1 %v1235_v28  ;;  %v1277_v28 = vld [vmem:[#allocation4] ss:$8 sps:$4 sm:$0xff]  }
  0x54   :  { %1184 = vmatprep.subr.bf16.mxu1 %v1395_v1  ;;  %v119_v1 = vsub.s32 1, %v1557_v61  ;;  %v1100_v61 = vld [vmem:[%s1647_s9] ss:$0 sm:$0xff] }
  0x55   :  { %277 = vmatpush1.bf16.msra.mxu0 %v1227_v22 }
  0x56   :  { %1126 = vmatprep.subr.bf16.mxu0 %v1237_v24  ;;  %v120_v3 = vrot.slane %v111_v63, %v119_v1 }
  0x57   :  { %1185 = vmatpush3.bf16.msra.mxu1 %v1236_v31  ;;  %v1280_v31 = vld [vmem:[#allocation4 + $0x10] ss:$8 sps:$4 sm:$0xff]  }
  0x58   :  { %295 = vmatmul.mubr.bf16.vlgmr.msra.gmra.mrb[0].mxu0 %v1228_v23  ;;  %646 = vmatprep.subr.bf16.mxu1 %v1255_v44  ;;  %v1302_v44 = vld [vmem:[%s1646_s8] sm:$0xff]  }
  0x59   :  { %1127 = vmatpush3.bf16.msra.mxu0 %v1238_v26 }
  0x5a   :  { %1128 = vmatprep.subr.bf16.mxu0 %v1239_v27  ;;  %1187 = vmatmul.mubr.bf16.vlgmr.msra.gmra.mrb[0].mxu1 %v1228_v23 }
  0x5b   :  { %678 = vmatprep.mubr.bf16.mxu1 %v1394_v0  ;;  %647 = vmatpush1.bf16.msra.mxu1 %v1253_v43  ;;  %v1301_v43 = vld [vmem:[%s1646_s8 + $0x40] sm:$0xff]  }
  0x5c   :  { %648 = vmatprep.subr.bf16.mxu1 %v1258_v45  ;;  %v1303_v45 = vld [vmem:[%s1646_s8 + $0x48] sm:$0xff]  }
  0x5d   :  { %1129 = vmatpush3.bf16.msra.mxu0 %v1240_v29 }
  0x5e   :  { %1130 = vmatprep.subr.bf16.mxu0 %v1241_v30  ;;  %v1282_v30 = vld [vmem:[#allocation4 + $0x14] ss:$8 sps:$4 sm:$0xff]  }
  0x5f   :  { %649 = vmatpush1.bf16.msra.mxu1 %v1256_v46  ;;  %v1304_v46 = vld [vmem:[%s1646_s8 + $0x8] sm:$0xff]  }
  0x60   :  { %650 = vmatprep.subr.bf16.mxu1 %v1261_v47  ;;  %v1305_v47 = vld [vmem:[%s1646_s8 + $0x50] sm:$0xff]  }
  0x61   :  { %1131 = vmatpush3.bf16.msra.mxu0 %v1242_v32  ;;  %v1285_v32 = vld [vmem:[#allocation4 + $0x24] ss:$8 sps:$4 sm:$0xff]  }
  0x62   :  { %1132 = vmatprep.subr.bf16.mxu0 %v1243_v33  ;;  %v1283_v33 = vld [vmem:[#allocation4 + $0x20] ss:$8 sps:$4 sm:$0xff]  }
  0x63   :  { %651 = vmatpush1.bf16.msra.mxu1 %v1259_v48  ;;  %v1306_v48 = vld [vmem:[%s1646_s8 + $0x10] sm:$0xff]  }
  0x64   :  { %652 = vmatprep.subr.bf16.mxu1 %v1264_v49  ;;  %v1307_v49 = vld [vmem:[%s1646_s8 + $0x58] sm:$0xff]  }
  0x65   :  { %1133 = vmatpush3.bf16.msra.mxu0 %v1244_v34  ;;  %v1288_v34 = vld [vmem:[#allocation4 + $0x34] ss:$8 sps:$4 sm:$0xff]  }
  0x66   :  { %1134 = vmatprep.subr.bf16.mxu0 %v1245_v35  ;;  %v1286_v35 = vld [vmem:[#allocation4 + $0x30] ss:$8 sps:$4 sm:$0xff]  }
  0x67   :  { %653 = vmatpush1.bf16.msra.mxu1 %v1262_v50  ;;  %v1308_v50 = vld [vmem:[%s1646_s8 + $0x18] sm:$0xff]  }
  0x68   :  { %654 = vmatprep.subr.bf16.mxu1 %v1267_v51  ;;  %v1309_v51 = vld [vmem:[%s1646_s8 + $0x60] sm:$0xff]  }
  0x69   :  { %1135 = vmatpush3.bf16.msra.mxu0 %v1246_v36  ;;  %v1291_v36 = vld [vmem:[#allocation4 + $0x44] ss:$8 sps:$4 sm:$0xff]  }
  0x6a   :  { %1136 = vmatprep.subr.bf16.mxu0 %v1247_v37  ;;  %v1289_v37 = vld [vmem:[#allocation4 + $0x40] ss:$8 sps:$4 sm:$0xff]  }
  0x6b   :  { %655 = vmatpush1.bf16.msra.mxu1 %v1265_v52  ;;  %v1310_v52 = vld [vmem:[%s1646_s8 + $0x20] sm:$0xff]  }
  0x6c   :  { %656 = vmatprep.subr.bf16.mxu1 %v1270_v53  ;;  %v1311_v53 = vld [vmem:[%s1646_s8 + $0x68] sm:$0xff]  }
  0x6d   :  { %1137 = vmatpush3.bf16.msra.mxu0 %v1248_v38  ;;  %v1294_v38 = vld [vmem:[#allocation4 + $0x54] ss:$8 sps:$4 sm:$0xff]  }
  0x6e   :  { %1138 = vmatprep.subr.bf16.mxu0 %v1249_v39  ;;  %v1292_v39 = vld [vmem:[#allocation4 + $0x50] ss:$8 sps:$4 sm:$0xff]  }
  0x6f   :  { %657 = vmatpush1.bf16.msra.mxu1 %v1268_v54 }
  0x70   :  { %658 = vmatprep.subr.bf16.mxu1 %v1273_v55  ;;  %v1051_v55 = vld [vmem:[%s1642_s4] ss:$0 sm:$0xff] }
  0x71   :  { %1139 = vmatpush3.bf16.msra.mxu0 %v1250_v40  ;;  %v1297_v40 = vld [vmem:[#allocation4 + $0x64] ss:$8 sps:$4 sm:$0xff]  }
  0x72   :  { %1140 = vmatprep.subr.bf16.mxu0 %v1251_v41  ;;  %v1300_v41 = vld [vmem:[#allocation4 + $0x74] ss:$8 sps:$4 sm:$0xff]  }
  0x73   :  { %659 = vmatpush1.bf16.msra.mxu1 %v1271_v56 }
  0x74   :  { %660 = vmatprep.subr.bf16.mxu1 %v1276_v57 }
  0x75   :  { %1141 = vmatpush3.bf16.msra.mxu0 %v1252_v42  ;;  %v1298_v42 = vld [vmem:[#allocation4 + $0x70] ss:$8 sps:$4 sm:$0xff]  }
  0x76   :  { %1148 = vmatprep.subr.bf16.mxu0 %v1301_v43 }
  0x77   :  { %661 = vmatpush1.bf16.msra.mxu1 %v1274_v58 }
  0x78   :  { %769 = vmatprep.subr.bf16.mxu1 %v1279_v59 }
 0x12b   :  { %v296_v4 = vpop.f32.mrb[0].mxu0 }
 0x12c   :  { %v297_v5 = vadd.f32 %v296_v4, %v116_v2  ;;  %v298_v6 = vpop.f32.mrb[1].mxu0 }
 0x12d   :  { %v299_v7 = vadd.f32 %v298_v6, %v120_v3  ;;  %v300_v8 = vpop.f32.mrb[2].mxu0  ;;  %v339_v20 = vpop.f32.mrb[0].mxu1 }
 0x12e   :  { %v301_v9 = vadd.f32 %v300_v8, %v116_v2  ;;  %v302_v10 = vpop.f32.mrb[3].mxu0  ;;  %v346_v13 = vmax.f32 %v297_v5, 0.0  ;;  %v340_v21 = vadd.f32 %v339_v20, %v124_v19  ;;  %v1188_v22 = vpop.f32.mrb[1].mxu1  ;;  %v1313_v8 = vld [vmem:[%s1646_s8 + $0x70] sm:$0xff]  }
 0x12f   :  { %v303_v11 = vadd.f32 %v302_v10, %v120_v3  ;;  %v347_v15 = vmax.f32 %v299_v7, 0.0  ;;  %v342_v23 = vpop.f32.mrb[2].mxu1  ;;  %v1312_v7 = vld [vmem:[%s1646_s8 + $0x28] sm:$0xff]   ;;  %v1315_v10 = vld [vmem:[%s1646_s8 + $0x78] sm:$0xff]  }
 0x130   :  { %v349_v14 = vmax.f32 %v301_v9, 0.0  ;;  %v348_v24 = vmax.f32 %v340_v21, 0.0  ;;  %v343_v25 = vadd.f32 %v342_v23, %v124_v19  ;;  %v1189_v26 = vpop.f32.mrb[3].mxu1  ;;  %v1314_v9 = vld [vmem:[%s1646_s8 + $0x30] sm:$0xff]  }
 0x131   :  { %v350_v16 = vmax.f32 %v303_v11, 0.0  ;;  %v1316_v11 = vld [vmem:[%s1646_s8 + $0x38] sm:$0xff]  }
 0x132   :  { %v352_v17 = vpack.c.bf16 %v349_v14, %v346_v13  ;;  %v351_v27 = vmax.f32 %v343_v25, 0.0  ;;  %v817_v13 = vrot.slane %v812_v12, %v115_v62  ;;  %v821_v14 = vrot.slane %v812_v12, %v119_v1 }
 0x133   :  { %v353_v18 = vpack.c.bf16 %v350_v16, %v347_v15 }
 0x134   :  { %v354_v29 = vpack.c.bf16 %v351_v27, %v348_v24 }
 0x135   :  { %522 = vmatprep.mubr.bf16.mxu0 %v353_v18 }
 0x136   :  { %523 = vmatmul.mubr.bf16.vlgmr.msra.gmra.mrb[4].mxu0 %v352_v17  ;;  %679 = vmatmul.mubr.bf16.vlgmr.msra.gmra.mrb[4].mxu1 %v354_v29  ;;  %v1011_v29 = vand.u32 127, %v113_v60 }
 0x137   :  { %770 = vmatpush1.bf16.msra.mxu1 %v1277_v28  ;;  %801 = vmatprep.mubr.bf16.mxu1 %v1394_v0  ;;  %v1295_v0 = vld [vmem:[#allocation4 + $0x60] ss:$8 sps:$4 sm:$0xff]  }
 0x138   :  { %771 = vmatprep.subr.bf16.mxu1 %v1282_v30  ;;  %1149 = vmatpush3.bf16.msra.mxu0 %v1302_v44  ;;  %vm1012_vm1 = vcmp.eq.s32.totalorder %v1011_v29, 1 }
 0x139   :  { %1150 = vmatprep.subr.bf16.mxu0 %v1303_v45 }
 0x13b   :  { %772 = vmatpush1.bf16.msra.mxu1 %v1280_v31 }
 0x13c   :  { %773 = vmatprep.subr.bf16.mxu1 %v1285_v32  ;;  %1151 = vmatpush3.bf16.msra.mxu0 %v1304_v46 }
 0x13d   :  { %1152 = vmatprep.subr.bf16.mxu0 %v1305_v47 }
 0x13f   :  { %774 = vmatpush1.bf16.msra.mxu1 %v1283_v33 }
 0x140   :  { %775 = vmatprep.subr.bf16.mxu1 %v1288_v34  ;;  %1153 = vmatpush3.bf16.msra.mxu0 %v1306_v48 }
 0x141   :  { %1154 = vmatprep.subr.bf16.mxu0 %v1307_v49 }
 0x143   :  { %776 = vmatpush1.bf16.msra.mxu1 %v1286_v35 }
 0x144   :  { %777 = vmatprep.subr.bf16.mxu1 %v1291_v36  ;;  %1155 = vmatpush3.bf16.msra.mxu0 %v1308_v50 }
 0x145   :  { %1156 = vmatprep.subr.bf16.mxu0 %v1309_v51 }
 0x147   :  { %778 = vmatpush1.bf16.msra.mxu1 %v1289_v37 }
 0x148   :  { %779 = vmatprep.subr.bf16.mxu1 %v1294_v38  ;;  %1157 = vmatpush3.bf16.msra.mxu0 %v1310_v52 }
 0x149   :  { %1158 = vmatprep.subr.bf16.mxu0 %v1311_v53 }
 0x14b   :  { %780 = vmatpush1.bf16.msra.mxu1 %v1292_v39 }
 0x14c   :  { %781 = vmatprep.subr.bf16.mxu1 %v1297_v40  ;;  %1159 = vmatpush3.bf16.msra.mxu0 %v1312_v7 }
 0x14d   :  { %1160 = vmatprep.subr.bf16.mxu0 %v1313_v8 }
 0x14f   :  { %782 = vmatpush1.bf16.msra.mxu1 %v1295_v0 }
 0x150   :  { %783 = vmatprep.subr.bf16.mxu1 %v1300_v41  ;;  %1161 = vmatpush3.bf16.msra.mxu0 %v1314_v9 }
 0x151   :  { %1162 = vmatprep.subr.bf16.mxu0 %v1315_v10 }
 0x153   :  { %784 = vmatpush1.bf16.msra.mxu1 %v1298_v42 }
 0x154   :  { %1163 = vmatpush3.bf16.msra.mxu0 %v1316_v11 }
 0x209   :  { %v1142_v54 = vpop.f32.mrb[4].mxu0 }
 0x20a   :  { %v1143_v56 = vpop.f32.mrb[5].mxu0 }
 0x20b   :  { %v1144_v57 = vadd.f32 %v1143_v56, %v1142_v54  ;;  %v1145_v58 = vpop.f32.mrb[6].mxu0 }
 0x20c   :  { %v1146_v59 = vpop.f32.mrb[7].mxu0 }
 0x20d   :  { %v525_v63 = vadd.f32 %v1144_v57, %v1051_v55  ;;  %v1147_v2 = vadd.f32 %v1146_v59, %v1145_v58 }
 0x20f   :  { %v528_v3 = vadd.f32 %v1147_v2, %v1051_v55  ;;  %v531_v4 = vmax.f32 %v525_v63, 0.0 }
 0x211   :  { %v532_v5 = vmax.f32 %v528_v3, 0.0 }
 0x213   :  { %v533_v6 = vpack.c.bf16 %v532_v5, %v531_v4 }
 0x215   :  { %802 = vmatmul.mubr.bf16.vlgmr.msra.gmra.mrb[4].mxu1 %v533_v6 }
 0x2e8   :  { %v803_v15 = vpop.f32.mrb[4].mxu1 }
 0x2e9   :  { %v824_v16 = vadd.f32 %v817_v13, %v803_v15  ;;  %v805_v17 = vpop.f32.mrb[5].mxu1 }
 0x2ea   :  { %v825_v18 = vadd.f32 %v821_v14, %v805_v17  ;;  %v807_v19 = vpop.f32.mrb[6].mxu1 }
 0x2eb   :  { %v826_v20 = vadd.f32 %v817_v13, %v807_v19  ;;  %v809_v21 = vpop.f32.mrb[7].mxu1  ;;  %v828_v23 = vmax.f32 %v824_v16, 0.0 }
 0x2ec   :  { %v827_v22 = vadd.f32 %v821_v14, %v809_v21  ;;  %v829_v25 = vmax.f32 %v825_v18, 0.0 }
 0x2ed   :  { %v830_v24 = vmax.f32 %v826_v20, 0.0 }
 0x2ee   :  { %v831_v26 = vmax.f32 %v827_v22, 0.0 }
 0x2ef   :  { %v832_v27 = vpack.c.bf16 %v830_v24, %v828_v23 }
 0x2f0   :  { %v833_v28 = vpack.c.bf16 %v831_v26, %v829_v25 }
 0x2f2   :  { %1001 = vmatprep.mubr.bf16.mxu0 %v833_v28 }
 0x2f3   :  { %1002 = vmatmul.mubr.bf16.vlgmr.msra.gmra.mrb[8].mxu0 %v832_v27 }
 0x3c6   :  { %v1164_v62 = vpop.f32.mrb[8].mxu0 }
 0x3c7   :  { %v1165_v1 = vpop.f32.mrb[9].mxu0 }
 0x3c8   :  { %v1166_v30 = vadd.f32 %v1165_v1, %v1164_v62  ;;  %v1167_v31 = vpop.f32.mrb[10].mxu0 }
 0x3c9   :  { %v1168_v32 = vpop.f32.mrb[11].mxu0 }
 0x3ca   :  { %v1004_v33 = vadd.f32 %v1166_v30, %v1100_v61  ;;  %v1169_v34 = vadd.f32 %v1168_v32, %v1167_v31 }
 0x3cc   :  { %v1013_v35 = vmul.f32 %v1004_v33, %v1004_v33  ;;  %v1007_v36 = vadd.f32 %v1169_v34, %v1100_v61 }
 0x3ce   :  { %v1015_v37 = vsel %vm1012_vm1, %v1013_v35, %v1004_v33  ;;  %v1014_v38 = vmul.f32 %v1007_v36, %v1007_v36 }
 0x3cf   :  { %1018 = vst.msk [vmem:[%s1648_s10] sm:$0xff] %vm1017_vm2, %v1015_v37 }
 0x3d0   :  { %v1016_v39 = vsel %vm1012_vm1, %v1014_v38, %v1007_v36 }
 0x3d1   :  { %1019 = vst.msk [vmem:[%s1648_s10 + $0x8] sm:$0xff] %vm1017_vm2, %v1016_v39 }
 0x3d2   :  { %1024 = vsyncpa [#allocation3], 1 }
 0x3d3   :  { %1025 = vsyncpa [#allocation5], 1 }

</bundles_post_ra>
